<compile_context>
chip_gen: v5e
topology: v5e:2x2
jax: 0.10.0
libtpu: 0.0.40
codegen_flags: <defaults>
</compile_context>

<pallas_src>
import jax
import jax.numpy as jnp
from jax.experimental import pallas as pl
from jax.experimental.pallas import tpu as pltpu


def _round_up(x: int, m: int) -> int:
    return ((x + m - 1) // m) * m


def _sparse_coding_matmul_kernel(coeff_ref, book_ref, out_ref):
    # coeff_ref : (tm, ntopic)  VMEM tile of coeff
    # book_ref  : (ntopic, emb) full code_book (same block every grid step)
    # out_ref   : (tm, emb)     output tile
    out_ref[...] = jnp.dot(
        coeff_ref[...], book_ref[...], preferred_element_type=jnp.float32
    ).astype(out_ref.dtype)


def sparse_coding_forward(
    coeff: jax.Array,
    code_book: jax.Array,
    *,
    tm: int | None = None,
    use_bf16: bool = False,
):
    """Pallas equivalent of SparseCoding.forward(): coeff @ code_book.

    tm:        M-tile size (rows of coeff per grid step). Auto-selected if None.
    use_bf16:  cast inputs to bf16 (halves coeff HBM traffic); accumulation and
               output stay f32.
    """
    nbow, ntopic = coeff.shape
    ntopic2, emb = code_book.shape
    assert ntopic == ntopic2
    out_dtype = jnp.float32

    if use_bf16:
        coeff_in = coeff.astype(jnp.bfloat16)
        book_in = code_book.astype(jnp.bfloat16)
    else:
        coeff_in = coeff
        book_in = code_book

    # ---- Tile selection -----------------------------------------------------
    # Memory-bound kernel -> large M tiles.  Sublane constraint: tm must be a
    # multiple of 8 (or equal nbow).  512 keeps >=2 "parallel" grid steps for
    # the v7x megacore whenever nbow > 512, is a multiple of 128 (v5e MXU) and
    # 256 (v6e/v7x MXU), and stays far below scoped-VMEM limits even on v5e
    # (double-buffered (512,32)+(512,128) f32 tiles ~= 0.6 MiB).
    if tm is None:
        if nbow <= 512:
            tm = _round_up(max(nbow, 8), 8)  # single-block fast path
        else:
            tm = 512
    tm = max(8, _round_up(tm, 8))
    tm = min(tm, _round_up(nbow, 8))

    # cdiv grid + zero padding on the M axis (padded rows are sliced off).
    nbow_p = _round_up(nbow, tm)
    if nbow_p != nbow:
        coeff_in = jnp.pad(coeff_in, ((0, nbow_p - nbow), (0, 0)))
    grid = (nbow_p // tm,)

    itemsize_in = coeff_in.dtype.itemsize
    cost = pl.CostEstimate(
        flops=2 * nbow_p * ntopic * emb,
        transcendentals=0,
        bytes_accessed=(
            nbow_p * ntopic * itemsize_in        # coeff read
            + ntopic * emb * book_in.dtype.itemsize  # code_book read
            + nbow_p * emb * 4                   # f32 output write
        ),
    )

    out = pl.pallas_call(
        _sparse_coding_matmul_kernel,
        out_shape=jax.ShapeDtypeStruct((nbow_p, emb), out_dtype),
        grid_spec=pltpu.PrefetchScalarGridSpec(
            num_scalar_prefetch=0,
            grid=grid,
            in_specs=[
                pl.BlockSpec((tm, ntopic), lambda i: (i, 0)),   # coeff tile
                pl.BlockSpec((ntopic, emb), lambda i: (0, 0)),  # full code_book
            ],
            out_specs=pl.BlockSpec((tm, emb), lambda i: (i, 0)),
        ),
        compiler_params=pltpu.CompilerParams(
            dimension_semantics=("parallel",),
        ),
        cost_estimate=cost,
    )(coeff_in, book_in)

    if nbow_p != nbow:
        out = out[:nbow]
    return out


if __name__ == "__main__":
    # Deterministic parameter init mirroring the module's __init__:
    #   code_book = randn(ntopic, emb_size); coeff = randn(nbow, ntopic)
    key = jax.random.PRNGKey(0)

    # --- Small case (module-scale example): single-block fast path ---------
    ntopic, nbow, emb_size = 32, 16, 128
    k_book, k_coeff, k_book2, k_coeff2 = jax.random.split(key, 4)
    code_book = jax.random.normal(k_book, (ntopic, emb_size), dtype=jnp.float32)
    coeff = jax.random.normal(k_coeff, (nbow, ntopic), dtype=jnp.float32)

    result = sparse_coding_forward(coeff, code_book)
    jax.block_until_ready(result)
    ref = coeff @ code_book
    assert result.shape == (nbow, emb_size)
    assert jnp.allclose(result, ref, atol=1e-5, rtol=1e-5)

    # bf16-input path (f32 accumulation) — looser tolerance vs. f32 reference.
    result_bf16 = sparse_coding_forward(coeff, code_book, use_bf16=True)
    jax.block_until_ready(result_bf16)
    assert jnp.allclose(result_bf16, ref, atol=0.5, rtol=5e-2)

    # --- Larger, non-divisible case: exercises cdiv grid + padding ----------
    nbow2 = 1000  # not a multiple of tm=512 -> padded to 1024, grid=(2,)
    code_book2 = jax.random.normal(k_book2, (ntopic, emb_size), dtype=jnp.float32)
    coeff2 = jax.random.normal(k_coeff2, (nbow2, ntopic), dtype=jnp.float32)

    result2 = sparse_coding_forward(coeff2, code_book2)
    jax.block_until_ready(result2)
    ref2 = coeff2 @ code_book2
    assert result2.shape == (nbow2, emb_size)
    assert jnp.allclose(result2, ref2, atol=1e-2, rtol=1e-2)

    print("KERNEL_OK")
</pallas_src>

<mosaic_0001>
module attributes {stable_mosaic.version = 11 : i64} {
  func.func @_sparse_coding_matmul_kernel(%arg0: i32, %arg1: memref<16x32xf32, #tpu.memory_space<vmem>>, %arg2: memref<32x128xf32, #tpu.memory_space<vmem>>, %arg3: memref<16x128xf32, #tpu.memory_space<vmem>>) attributes {dimension_semantics = [#tpu.dimension_semantics<parallel>], iteration_bounds = array<i64: 1>, scalar_prefetch = 0 : i64, scratch_operands = 0 : i64, tpu.core_type = #tpu.core_type<tc>, window_params = [{transform_indices = @transform_0, window_bounds = array<i64: 16, 32>}, {pipeline_mode = #tpu.pipeline_mode<synchronous>, transform_indices = @transform_1, window_bounds = array<i64: 32, 128>}, {transform_indices = @transform_2, window_bounds = array<i64: 16, 128>}]} {
    %c0 = arith.constant 0 : index
    %c0_0 = arith.constant 0 : index
    %0 = vector.load %arg1[%c0, %c0_0] : memref<16x32xf32, #tpu.memory_space<vmem>>, vector<16x32xf32>
    %c0_1 = arith.constant 0 : index
    %c0_2 = arith.constant 0 : index
    %1 = vector.load %arg2[%c0_1, %c0_2] : memref<32x128xf32, #tpu.memory_space<vmem>>, vector<32x128xf32>
    %cst = arith.constant dense<0.000000e+00> : vector<16x128xf32>
    %2 = tpu.matmul %0, %1, %cst {dimension_numbers = #tpu.dot_dimension_numbers<[1], [0], [0], [1], [0, 0, 1, 1], [], []>} : vector<16x32xf32>, vector<32x128xf32>, vector<16x128xf32> -> vector<16x128xf32>
    %c0_3 = arith.constant 0 : index
    %c0_4 = arith.constant 0 : index
    %3 = vector.load %arg3[%c0_3, %c0_4] : memref<16x128xf32, #tpu.memory_space<vmem>>, vector<16x128xf32>
    tpu.vector_store %arg3[%c0_3, %c0_4], %2 {strides = array<i32>} : memref<16x128xf32, #tpu.memory_space<vmem>>, vector<16x128xf32>,
    return
  }
  func.func @transform_0(%arg0: i32) -> (i32, i32) {
    %c0_i32 = arith.constant 0 : i32
    %c0_i32_0 = arith.constant 0 : i32
    return %arg0, %c0_i32 : i32, i32
  }
  func.func @transform_1(%arg0: i32) -> (i32, i32) {
    %c0_i32 = arith.constant 0 : i32
    %c0_i32_0 = arith.constant 0 : i32
    %c0_i32_1 = arith.constant 0 : i32
    return %c0_i32, %c0_i32_0 : i32, i32
  }
  func.func @transform_2(%arg0: i32) -> (i32, i32) {
    %c0_i32 = arith.constant 0 : i32
    %c0_i32_0 = arith.constant 0 : i32
    return %arg0, %c0_i32 : i32, i32
  }
}

</mosaic_0001>

<bundles_post_ra>
// kernel: tpu_custom_call.1
= control target key start
LH: loop header
LB: loop body
LE: loop exit
PB: predicated region body
PF: predicated region fallthrough
CT: control target
= control target key end

     0   :  { %7 = vsyncpa [#allocation3], 0  ;;  %s229_s0 = inlined_call_operand.hbm [shape: f32[16,32], index: 0, kind: input, shape index: {}]   ;;  %s230_s1 = inlined_call_operand.hbm [shape: f32[32,128], index: 1, kind: input, shape index: {}]   ;;  %s231_s2 = inlined_call_operand.hbm [shape: f32[16,128], index: 2, kind: output, shape index: {}]  }
   0x1   :  { %8 = vsyncpa [#allocation6], 0 }
   0x2   :  { %9 = vsyncpa [#allocation4], 0  ;;  %s14_s11 = sshll.u32 %s229_s0, 4  ;;  %s191_s12 = smov [#allocation2]   ;;  %s15_s11 = int_to_ptr.hbm [resolvable:$true] %s14_s11 }
   0x3   :  { %s16_s13 = sshll.u32 %s191_s12, 4  ;;  %s27_s16 = sshll.u32 %s230_s1, 4  ;;  %s17_s13 = int_to_ptr.vmem [resolvable:$true] %s16_s13  ;;  %s28_s16 = int_to_ptr.hbm [resolvable:$true] %s27_s16 }
   0x4   :  { %s192_s17 = smov 128   ;;  %s193_s18 = smov 8  }
   0x5   :  { %22 = dma.hbm_to_vmem [thread:$0]  %s15_s11, 256, %s17_s13, [#allocation3], %s192_s17, %s192_s17, %s193_s18  }
   0x6   :  { %s194_s19 = smov [#allocation5]  }
   0x7   :  { %s29_s20 = sshll.u32 %s194_s19, 4  ;;  %s30_s20 = int_to_ptr.vmem [resolvable:$true] %s29_s20 }
   0x8   :  { %35 = dma.hbm_to_vmem [thread:$0]  %s28_s16, 512, %s30_s20, [#allocation6], %s192_s17, %s192_s17, %s193_s18  }
   0x9   :  { %185 = dma.done.wait [#allocation3], 256  }
   0xa   :  { %186 = vsyncadd [#allocation3], 4294967040 }
   0xb   :  { %187 = dma.done.wait [#allocation6], 512  }
   0xc   :  { %188 = vsyncadd [#allocation6], 4294966784  ;;  %v49_v0 = vld [vmem:[#allocation5 + $0x18] sm:$0xff]  ;;  %v48_v1 = vld [vmem:[#allocation5 + $0x10] sm:$0xff]  ;;  %vm50_vm0 = vcmask 261120   ;;  %s195_s0 = smov [#allocation7]  }
   0xd   :  { %69 = vmatpush.msra.mxu0 %v49_v0  ;;  %104 = vmatpush.msra.mxu1 %v49_v0  ;;  %v47_v2 = vld [vmem:[#allocation5 + $0x8] sm:$0xff]  ;;  %v46_v3 = vld [vmem:[#allocation5] sm:$0xff]  ;;  %v44_v4 = vld [vmem:[#allocation2] sm:$0xff]  ;;  %s86_s1 = sshll.u32 %s195_s0, 4  ;;  %s88_s23 = sshll.u32 %s231_s2, 4  ;;  %s87_s1 = int_to_ptr.vmem [resolvable:$true] %s86_s1  ;;  %s89_s23 = int_to_ptr.hbm [resolvable:$true] %s88_s23 }
   0xe   :  { %v45_v5 = vld [vmem:[#allocation2 + $0x8] sm:$0xff] }
   0xf   :  { %70 = vmatpush.msra.mxu0 %v48_v1  ;;  %105 = vmatpush.msra.mxu1 %v48_v1 }
  0x11   :  { %71 = vmatpush.msra.mxu0 %v47_v2  ;;  %106 = vmatpush.msra.mxu1 %v47_v2 }
  0x13   :  { %72 = vmatpush.msra.mxu0 %v46_v3  ;;  %107 = vmatpush.msra.mxu1 %v46_v3 }
  0x14   :  { %102 = vmatmul.msk.f32.vlgmr.msra.gmra.mxu0 %vm50_vm0, %v44_v4  ;;  %103 = vmatmul.msk.f32.vlgmr.msra.gmra.mxu1 %vm50_vm0, %v45_v5 }
  0x91   :  { %v74_v6 = vpop.f32.mrf.mxu0  ;;  %v77_v7 = vpop.f32.mrf.mxu1 }
  0x92   :  { %80 = vst [vmem:[#allocation7] sm:$0xff] %v74_v6 }
  0x93   :  { %81 = vst [vmem:[#allocation7 + $0x8] sm:$0xff] %v77_v7 }
  0x94   :  { %94 = dma.vmem_to_hbm [thread:$0]  %s87_s1, 256, %s89_s23, [#allocation4], %s192_s17, %s192_s17, %s193_s18  }
  0x95   :  { %189 = dma.done.wait [#allocation4], 256  }
  0x96   :  { %190 = vsyncadd [#allocation4], 4294967040 }
  0x97   :  { %99 = vsyncpa [#allocation3], 1 }
  0x98   :  { %100 = vsyncpa [#allocation6], 1 }
  0x99   :  { %101 = vsyncpa [#allocation4], 1 }

</bundles_post_ra>
